<compile_context>
chip_gen: v5e
topology: v5e:2x2
jax: 0.10.0
libtpu: 0.0.40
codegen_flags: <defaults>
</compile_context>

<pallas_src>
import functools

import jax
import jax.numpy as jnp
from jax import lax
from jax.experimental import pallas as pl
from jax.experimental.pallas import tpu as pltpu


def _ranknet_kernel(x1_ref, x2_ref, w_ref, o_ref):
    """One batch tile: o = sigmoid(x1 @ w_eff - x2 @ w_eff), lane-dense.

    x1_ref, x2_ref: (bb, F) batch tiles (rows on sublanes, features on lanes).
    w_ref:          (1, F)  folded weight row, resident in VMEM.
    o_ref:          (1, bb) scores with the batch on lanes.
    """
    # NT matmul (contract the feature axis of both operands): the MXU emits
    # the (1, bb) score row directly, so no (bb, 1) column and no in-kernel
    # relayout/transpose is ever needed.
    nt = (((1,), (1,)), ((), ()))
    s1 = lax.dot_general(w_ref[...], x1_ref[...], nt,
                         preferred_element_type=jnp.float32)
    s2 = lax.dot_general(w_ref[...], x2_ref[...], nt,
                         preferred_element_type=jnp.float32)
    # Bias terms cancel in s1 - s2; subtract the f32 accumulators (f32 VPU op,
    # safe on v5e even with bf16 inputs).
    o_ref[...] = jax.nn.sigmoid(s1 - s2).astype(o_ref.dtype)


def _round_up(x, m):
    return ((x + m - 1) // m) * m


@functools.partial(jax.jit, static_argnames=("block_b",))
def ranknet_forward(x1, x2, params, *, block_b=4096):
    """RankNet.forward(input_1, input_2) -> sigmoid(s1 - s2), shape (B, 1)."""
    w1, b1, w2, b2, w3, b3 = params
    B, F = x1.shape
    assert x2.shape == (B, F), "input_1 / input_2 shapes must match"
    assert x2.dtype == x1.dtype, "input_1 / input_2 dtypes must match"

    out_dtype = jnp.result_type(x1.dtype, w1.dtype)

    # Fold the affine scorer.  Biases cancel in s1 - s2, so only
    # w_eff = w1 @ w2 @ w3 (F, 1) is needed.  Fold in f32, then cast to the
    # input dtype so the kernel's MXU operands are homogeneous (bf16 is fed
    # natively; accumulation is f32 via preferred_element_type).
    w_eff = (w1.astype(jnp.float32) @ w2.astype(jnp.float32)
             @ w3.astype(jnp.float32))                       # (F, 1)
    w_row = w_eff.reshape(1, F).astype(x1.dtype)             # (1, F)

    # Batch tile: a multiple of 128 (lane-dense output blocks; also covers
    # every input sublane packing), as large as requested, but capped so the
    # grid keeps >= 2 steps whenever B allows it (v7x: two TensorCores split
    # the "parallel" grid axis).
    bb = min(block_b, max(128, _round_up(-(-B // 2), 128)))
    bb = _round_up(bb, 128)
    B_pad = _round_up(B, bb)
    grid = (B_pad // bb,)

    if B_pad != B:
        pad = ((0, B_pad - B), (0, 0))
        x1 = jnp.pad(x1, pad)
        x2 = jnp.pad(x2, pad)

    x_spec = pl.BlockSpec((bb, F), lambda i: (i, 0))
    w_spec = pl.BlockSpec((1, F), lambda i: (0, 0))      # resident, no re-DMA
    out_spec = pl.BlockSpec((1, bb), lambda i: (0, i))   # lane-dense scores

    out = pl.pallas_call(
        _ranknet_kernel,
        out_shape=jax.ShapeDtypeStruct((1, B_pad), out_dtype),
        grid_spec=pltpu.PrefetchScalarGridSpec(
            num_scalar_prefetch=0,
            grid=grid,
            in_specs=[x_spec, x_spec, w_spec],
            out_specs=out_spec,
        ),
        compiler_params=pltpu.CompilerParams(
            dimension_semantics=("parallel",)),
    )(x1, x2, w_row)

    # Restore the PyTorch (B, 1) layout; padded rows (score 0 -> 0.5) drop out.
    return out.reshape(B_pad, 1)[:B]


def init_ranknet_params(key, num_feature, dtype=jnp.float32):
    """Synthetic init mirroring nn.Linear default (U[-1/sqrt(in), 1/sqrt(in)]).

    Weights are (in, out); biases are (1, out).  Biases are only used by the
    pure-JAX reference (they cancel inside the kernel).
    """
    dims = [(num_feature, 32), (32, 16), (16, 1)]
    params = []
    for fan_in, fan_out in dims:
        key, kw, kb = jax.random.split(key, 3)
        bound = 1.0 / jnp.sqrt(jnp.asarray(fan_in, jnp.float32))
        w = jax.random.uniform(kw, (fan_in, fan_out), dtype,
                               minval=-bound, maxval=bound)
        b = jax.random.uniform(kb, (1, fan_out), dtype,
                               minval=-bound, maxval=bound)
        params += [w, b]
    return tuple(params)


def _ranknet_reference(x1, x2, params):
    """Pure-JAX reference mirroring the torch module (3 Linear layers + biases)."""
    w1, b1, w2, b2, w3, b3 = params

    def mlp(x):
        h = x @ w1 + b1
        h = h @ w2 + b2
        h = h @ w3 + b3
        return h

    return jax.nn.sigmoid(mlp(x1) - mlp(x2))


if __name__ == "__main__":
    num_feature = 24   # RankNet(num_feature)

    key = jax.random.PRNGKey(0)
    key, k1, k2, kp = jax.random.split(key, 4)
    params = init_ranknet_params(kp, num_feature)

    # --- f32 check; batch not a multiple of the tile -> exercises padding,
    #     and the auto tile cap keeps a 2-step grid (both v7x TensorCores).
    #     Tolerance is loose enough to cover MXU default-precision f32 matmul
    #     and the (exact-in-real-arithmetic) folded-weight reassociation.
    batch = 200
    x1 = jax.random.normal(k1, (batch, num_feature), jnp.float32)
    x2 = jax.random.normal(k2, (batch, num_feature), jnp.float32)

    out = jax.block_until_ready(ranknet_forward(x1, x2, params))
    ref = _ranknet_reference(x1, x2, params)
    assert out.shape == (batch, 1)
    assert jnp.allclose(out, ref, atol=2e-3, rtol=2e-3), "f32 mismatch vs reference"

    # --- bf16-input check (bf16 fed natively to the MXU; f32 accumulation and
    #     f32 output).
    batch_bf = 1000
    key, k3, k4 = jax.random.split(key, 3)
    y1 = jax.random.normal(k3, (batch_bf, num_feature), jnp.float32).astype(jnp.bfloat16)
    y2 = jax.random.normal(k4, (batch_bf, num_feature), jnp.float32).astype(jnp.bfloat16)

    out_bf = jax.block_until_ready(ranknet_forward(y1, y2, params))
    ref_bf = _ranknet_reference(y1.astype(jnp.float32), y2.astype(jnp.float32), params)
    assert out_bf.shape == (batch_bf, 1)
    assert out_bf.dtype == jnp.float32
    assert jnp.allclose(out_bf, ref_bf, atol=2e-2, rtol=2e-2), "bf16 mismatch vs reference"

    print("KERNEL_OK")
</pallas_src>

<mosaic_0001>
module attributes {stable_mosaic.version = 11 : i64} {
  func.func @_ranknet_kernel(%arg0: i32, %arg1: memref<128x24xf32, #tpu.memory_space<vmem>>, %arg2: memref<128x24xf32, #tpu.memory_space<vmem>>, %arg3: memref<1x24xf32, #tpu.memory_space<vmem>>, %arg4: memref<1x128xf32, #tpu.memory_space<vmem>>) attributes {dimension_semantics = [#tpu.dimension_semantics<parallel>], iteration_bounds = array<i64: 2>, scalar_prefetch = 0 : i64, scratch_operands = 0 : i64, tpu.core_type = #tpu.core_type<tc>, window_params = [{transform_indices = @transform_0, window_bounds = array<i64: 128, 24>}, {transform_indices = @transform_1, window_bounds = array<i64: 128, 24>}, {pipeline_mode = #tpu.pipeline_mode<synchronous>, transform_indices = @transform_2, window_bounds = array<i64: 1, 24>}, {transform_indices = @transform_3, window_bounds = array<i64: 1, 128>}]} {
    %c0 = arith.constant 0 : index
    %c0_0 = arith.constant 0 : index
    %0 = vector.load %arg3[%c0, %c0_0] : memref<1x24xf32, #tpu.memory_space<vmem>>, vector<1x24xf32>
    %c0_1 = arith.constant 0 : index
    %c0_2 = arith.constant 0 : index
    %1 = vector.load %arg1[%c0_1, %c0_2] : memref<128x24xf32, #tpu.memory_space<vmem>>, vector<128x24xf32>
    %cst = arith.constant dense<0.000000e+00> : vector<1x128xf32>
    %2 = tpu.matmul %0, %1, %cst {dimension_numbers = #tpu.dot_dimension_numbers<[1], [1], [0], [0], [0, 0, 1, 0], [], []>} : vector<1x24xf32>, vector<128x24xf32>, vector<1x128xf32> -> vector<1x128xf32>
    %c0_3 = arith.constant 0 : index
    %c0_4 = arith.constant 0 : index
    %3 = vector.load %arg3[%c0_3, %c0_4] : memref<1x24xf32, #tpu.memory_space<vmem>>, vector<1x24xf32>
    %c0_5 = arith.constant 0 : index
    %c0_6 = arith.constant 0 : index
    %4 = vector.load %arg2[%c0_5, %c0_6] : memref<128x24xf32, #tpu.memory_space<vmem>>, vector<128x24xf32>
    %cst_7 = arith.constant dense<0.000000e+00> : vector<1x128xf32>
    %5 = tpu.matmul %3, %4, %cst_7 {dimension_numbers = #tpu.dot_dimension_numbers<[1], [1], [0], [0], [0, 0, 1, 0], [], []>} : vector<1x24xf32>, vector<128x24xf32>, vector<1x128xf32> -> vector<1x128xf32>
    %6 = arith.subf %2, %5 : vector<1x128xf32>
    %7 = arith.negf %6 : vector<1x128xf32>
    %8 = math.exp %7 : vector<1x128xf32>
    %cst_8 = arith.constant 1.000000e+00 : f32
    %9 = vector.broadcast %cst_8 : f32 to vector<1x128xf32>
    %10 = arith.addf %9, %8 : vector<1x128xf32>
    %11 = arith.divf %9, %10 : vector<1x128xf32>
    %c0_9 = arith.constant 0 : index
    %c0_10 = arith.constant 0 : index
    %12 = vector.load %arg4[%c0_9, %c0_10] : memref<1x128xf32, #tpu.memory_space<vmem>>, vector<1x128xf32>
    tpu.vector_store %arg4[%c0_9, %c0_10], %11 {strides = array<i32>} : memref<1x128xf32, #tpu.memory_space<vmem>>, vector<1x128xf32>,
    return
  }
  func.func @transform_0(%arg0: i32) -> (i32, i32) {
    %c0_i32 = arith.constant 0 : i32
    %c0_i32_0 = arith.constant 0 : i32
    return %arg0, %c0_i32 : i32, i32
  }
  func.func @transform_1(%arg0: i32) -> (i32, i32) {
    %c0_i32 = arith.constant 0 : i32
    %c0_i32_0 = arith.constant 0 : i32
    return %arg0, %c0_i32 : i32, i32
  }
  func.func @transform_2(%arg0: i32) -> (i32, i32) {
    %c0_i32 = arith.constant 0 : i32
    %c0_i32_0 = arith.constant 0 : i32
    %c0_i32_1 = arith.constant 0 : i32
    return %c0_i32, %c0_i32_0 : i32, i32
  }
  func.func @transform_3(%arg0: i32) -> (i32, i32) {
    %c0_i32 = arith.constant 0 : i32
    %c0_i32_0 = arith.constant 0 : i32
    return %c0_i32, %arg0 : i32, i32
  }
}

</mosaic_0001>

<bundles_post_ra>
// kernel: ranknet_forward.1
= control target key start
LH: loop header
LB: loop body
LE: loop exit
PB: predicated region body
PF: predicated region fallthrough
CT: control target
= control target key end

     0   :  { %s530_s12 = smov 0   ;;  %s628_s0 = inlined_call_operand.vmem [shape: f32[256,24], index: 0, kind: input, shape index: {}]   ;;  %s629_s1 = inlined_call_operand.vmem [shape: f32[256,24], index: 1, kind: input, shape index: {}]   ;;  %s630_s2 = inlined_call_operand.vmem [shape: f32[1,24], index: 2, kind: input, shape index: {}]   ;;  %s631_s3 = inlined_call_operand.vmem [shape: f32[1,256], index: 3, kind: output, shape index: {}]  }
   0x1 LB: > { %s536_s13 = sadd.s32 4294967295, %s508_s12   ;;  %p448_p0 = scmp.ge.s32.totalorder %s508_s12, 1  ;;  %s508_s12 = sphi %s530_s12, %s13_s12  }
   0x2   : > { %p149_p1 = scmp.lt.s32.totalorder %s508_s12, 3 }
   0x4   : > { %p150_p2 = pnand %p448_p0, %p149_p1 }
   0x5   : > { %s449_s14 = sshll.u32 (!%p150_p2), %s536_s13, 4  ;;  %p188_p4 = scmp.lt.s32.totalorder (!%p150_p2), %s536_s13, 1 }
   0x6   : > { %153 = sbr.rel (%p150_p2) target bundleno = 236 (0xec), region = 32  ;;  %p177_p3 = scmp.lt.s32.totalorder (!%p150_p2), %s449_s14, 31 }
   0xb   : > { %s633_s14 = smov (!%p177_p3, %s449_s14), 31  ;;  %vm208_vm0 = vcmask 195584   ;;  %v191_v32 = vld [vmem:[%s630_s2] sm:$0x1]  ;;  %s635_s13 = smov (!%p188_p4, %s536_s13), 1 }
   0xc   : > { %s450_s15 = sshll.u32 %s633_s14, 3  ;;  %s190_s26 = scalar_lea.vmem %s631_s3, %s635_s13 }
   0xd   : > { %s544_s18 = scalar_lea.vmem %s628_s0, %s450_s15  ;;  %s549_s21 = scalar_lea.vmem %s629_s1, %s450_s15 }
   0xe   : > { %v207_v0 = vld [vmem:[%s544_s18 + $0x78] sm:$0xff]  ;;  %v206_v2 = vld [vmem:[%s544_s18 + $0x70] sm:$0xff]  ;;  %v205_v4 = vld [vmem:[%s544_s18 + $0x68] sm:$0xff] }
   0xf   : > { %v295_v1 = vld [vmem:[%s549_s21 + $0x78] sm:$0xff]  ;;  %453 = vmatpush.xpose.msk.msra.mxu0 %vm208_vm0, %v207_v0  ;;  %v294_v3 = vld [vmem:[%s549_s21 + $0x70] sm:$0xff]  ;;  %v293_v5 = vld [vmem:[%s549_s21 + $0x68] sm:$0xff] }
  0x10   : > { %470 = vmatpush.xpose.msk.msra.mxu1 %vm208_vm0, %v295_v1  ;;  %v204_v6 = vld [vmem:[%s544_s18 + $0x60] sm:$0xff]  ;;  %v203_v8 = vld [vmem:[%s544_s18 + $0x58] sm:$0xff]  ;;  %v202_v10 = vld [vmem:[%s544_s18 + $0x50] sm:$0xff] }
  0x11   : > { %v292_v7 = vld [vmem:[%s549_s21 + $0x60] sm:$0xff]  ;;  %v291_v9 = vld [vmem:[%s549_s21 + $0x58] sm:$0xff]  ;;  %v290_v11 = vld [vmem:[%s549_s21 + $0x50] sm:$0xff] }
  0x12   : > { %v201_v12 = vld [vmem:[%s544_s18 + $0x48] sm:$0xff]  ;;  %v200_v14 = vld [vmem:[%s544_s18 + $0x40] sm:$0xff]  ;;  %v199_v16 = vld [vmem:[%s544_s18 + $0x38] sm:$0xff] }
  0x13   : > { %454 = vmatpush.xpose.msk.msra.mxu0 %vm208_vm0, %v206_v2  ;;  %v289_v13 = vld [vmem:[%s549_s21 + $0x48] sm:$0xff]  ;;  %v288_v15 = vld [vmem:[%s549_s21 + $0x40] sm:$0xff]  ;;  %v287_v17 = vld [vmem:[%s549_s21 + $0x38] sm:$0xff] }
  0x14   : > { %471 = vmatpush.xpose.msk.msra.mxu1 %vm208_vm0, %v294_v3  ;;  %v198_v18 = vld [vmem:[%s544_s18 + $0x30] sm:$0xff]  ;;  %v197_v20 = vld [vmem:[%s544_s18 + $0x28] sm:$0xff]  ;;  %v196_v22 = vld [vmem:[%s544_s18 + $0x20] sm:$0xff] }
  0x15   : > { %v286_v19 = vld [vmem:[%s549_s21 + $0x30] sm:$0xff]  ;;  %v285_v21 = vld [vmem:[%s549_s21 + $0x28] sm:$0xff]  ;;  %v284_v23 = vld [vmem:[%s549_s21 + $0x20] sm:$0xff] }
  0x16   : > { %v195_v24 = vld [vmem:[%s544_s18 + $0x18] sm:$0xff]  ;;  %v194_v26 = vld [vmem:[%s544_s18 + $0x10] sm:$0xff]  ;;  %v193_v28 = vld [vmem:[%s544_s18 + $0x8] sm:$0xff] }
  0x17   : > { %455 = vmatpush.xpose.msk.msra.mxu0 %vm208_vm0, %v205_v4  ;;  %v283_v25 = vld [vmem:[%s549_s21 + $0x18] sm:$0xff]  ;;  %v282_v27 = vld [vmem:[%s549_s21 + $0x10] sm:$0xff]  ;;  %v281_v29 = vld [vmem:[%s549_s21 + $0x8] sm:$0xff] }
  0x18   : > { %472 = vmatpush.xpose.msk.msra.mxu1 %vm208_vm0, %v293_v5  ;;  %v192_v30 = vld [vmem:[%s544_s18] sm:$0xff] }
  0x19   : > { %v280_v31 = vld [vmem:[%s549_s21] sm:$0xff] }
  0x1b   : > { %456 = vmatpush.xpose.msk.msra.mxu0 %vm208_vm0, %v204_v6 }
  0x1c   : > { %473 = vmatpush.xpose.msk.msra.mxu1 %vm208_vm0, %v292_v7 }
  0x1f   : > { %457 = vmatpush.xpose.msk.msra.mxu0 %vm208_vm0, %v203_v8 }
  0x20   : > { %474 = vmatpush.xpose.msk.msra.mxu1 %vm208_vm0, %v291_v9 }
  0x23   : > { %458 = vmatpush.xpose.msk.msra.mxu0 %vm208_vm0, %v202_v10 }
  0x24   : > { %475 = vmatpush.xpose.msk.msra.mxu1 %vm208_vm0, %v290_v11 }
  0x27   : > { %459 = vmatpush.xpose.msk.msra.mxu0 %vm208_vm0, %v201_v12 }
  0x28   : > { %476 = vmatpush.xpose.msk.msra.mxu1 %vm208_vm0, %v289_v13 }
  0x2b   : > { %460 = vmatpush.xpose.msk.msra.mxu0 %vm208_vm0, %v200_v14 }
  0x2c   : > { %477 = vmatpush.xpose.msk.msra.mxu1 %vm208_vm0, %v288_v15 }
  0x2f   : > { %461 = vmatpush.xpose.msk.msra.mxu0 %vm208_vm0, %v199_v16 }
  0x30   : > { %478 = vmatpush.xpose.msk.msra.mxu1 %vm208_vm0, %v287_v17 }
  0x33   : > { %462 = vmatpush.xpose.msk.msra.mxu0 %vm208_vm0, %v198_v18 }
  0x34   : > { %479 = vmatpush.xpose.msk.msra.mxu1 %vm208_vm0, %v286_v19 }
  0x37   : > { %463 = vmatpush.xpose.msk.msra.mxu0 %vm208_vm0, %v197_v20 }
  0x38   : > { %480 = vmatpush.xpose.msk.msra.mxu1 %vm208_vm0, %v285_v21 }
  0x3b   : > { %464 = vmatpush.xpose.msk.msra.mxu0 %vm208_vm0, %v196_v22 }
  0x3c   : > { %481 = vmatpush.xpose.msk.msra.mxu1 %vm208_vm0, %v284_v23 }
  0x3f   : > { %465 = vmatpush.xpose.msk.msra.mxu0 %vm208_vm0, %v195_v24 }
  0x40   : > { %482 = vmatpush.xpose.msk.msra.mxu1 %vm208_vm0, %v283_v25 }
  0x43   : > { %466 = vmatpush.xpose.msk.msra.mxu0 %vm208_vm0, %v194_v26 }
  0x44   : > { %483 = vmatpush.xpose.msk.msra.mxu1 %vm208_vm0, %v282_v27 }
  0x47   : > { %467 = vmatpush.xpose.msk.msra.mxu0 %vm208_vm0, %v193_v28 }
  0x48   : > { %484 = vmatpush.xpose.msk.msra.mxu1 %vm208_vm0, %v281_v29 }
  0x4b   : > { %468 = vmatpush.xpose.msk.msra.mxu0 %vm208_vm0, %v192_v30 }
  0x4c   : > { %485 = vmatpush.xpose.msk.msra.mxu1 %vm208_vm0, %v280_v31 }
  0x4e   : > { %469 = vmatmul.msk.f32.vlgmr.msra.gmra.mxu0 %vm208_vm0, %v191_v32 }
  0x4f   : > { %486 = vmatmul.msk.f32.vlgmr.msra.gmra.mxu1 %vm208_vm0, %v191_v32 }
  0xcb   : > { %v277_v33 = vpop.f32.mrf.mxu0 }
  0xcc   : > { %v361_v34 = vpop.f32.mrf.mxu1 }
  0xcd   : > { %v364_v35 = vsub.f32 %v277_v33, %v361_v34 }
  0xcf   : > { %v487_v36 = vmul.f32 -1.442695, %v364_v35 }
  0xd1   : > { %498 = vpow2.f32 %v487_v36 }
  0xd7   : > { %v499_v37 = vpop.eup %498 }
  0xd8   : > { %v368_v38 = vadd.f32 1.0, %v499_v37 }
  0xda   : > { %500 = vrcp.f32 %v368_v38  ;;  %v380_v42 = vand.u32 2147483648, %v368_v38  ;;  %v378_v44 = vand.u32 2147483647, %v368_v38  ;;  %vm374_vm2 = vweird.f32 %v368_v38 }
  0xdc   : > { %v381_v46 = vor.u32 1.1754944e-38, %v380_v42  ;;  %vm379_vm4 = vcmp.eq.f32.partialorder %v378_v44, 8.507059e+37 }
  0xe0   : > { %v501_v39 = vpop.eup %500 }
  0xe1   : > { %v370_v40 = vmul.f32 %v501_v39, %v368_v38  ;;  %vm375_vm1 = vweird.f32 %v501_v39 }
  0xe2   : > { %vm376_vm3 = vmor %vm374_vm2, %vm375_vm1 }
  0xe3   : > { %v371_v41 = vsub.f32 1.0, %v370_v40 }
  0xe5   : > { %v372_v43 = vmul.f32 %v501_v39, %v371_v41 }
  0xe7   : > { %v373_v45 = vadd.f32 %v501_v39, %v372_v43 }
  0xe9   : > { %v377_v47 = vsel %vm376_vm3, %v501_v39, %v373_v45 }
  0xea   : > { %v382_v48 = vsel %vm379_vm4, %v381_v46, %v377_v47 }
  0xeb   : > { %384 = vst [vmem:[%s190_s26] sm:$0x1] %v382_v48 }
  0xec PF: > { %s13_s12 = sadd.s32 1, %s508_s12  }
  0xed   : > { %p10_p5 = scmp.ge.s32.totalorder %s13_s12, 4  }
  0xef   :  { %12 = sbr.rel (!%p10_p5) target bundleno = 1 (0x1), region = 65 }

</bundles_post_ra>
